<compile_context>
chip_gen: v7x
topology: tpu7x:2x2x1
jax: 0.10.0
libtpu: 0.0.40
codegen_flags: <defaults>
</compile_context>

<pallas_src>
import jax
import jax.numpy as jnp
from jax.experimental import pallas as pl
from jax.experimental.pallas import tpu as pltpu


def _round_up(n: int, m: int) -> int:
    return ((n + m - 1) // m) * m


def _cdiv(a: int, b: int) -> int:
    return -(-a // b)


def _vmem_capacity_bytes() -> int:
    try:
        return int(pltpu.get_tpu_info().vmem_capacity_bytes)
    except Exception:
        return 64 << 20  # conservative fallback (v7x per-TC VMEM)


# ---------------------------------------------------------------------------
# Kernel: one (batch tile, hidden chunk) grid step.
# grid = (num_batch_tiles, num_hidden_chunks); hidden axis is a reduction
# ("arbitrary", innermost).  acc_ref is the resident f32 logits accumulator.
# ---------------------------------------------------------------------------
def mlp_kernel(x_ref, w1_ref, b1_ref, w2_ref, b2_ref, o_ref, acc_ref):
    h_idx = pl.program_id(1)

    @pl.when(h_idx == 0)
    def _init():
        acc_ref[...] = jnp.zeros_like(acc_ref)

    # fc1 chunk (MXU, f32 accumulation) + bias + ReLU in f32.
    h = jnp.dot(x_ref[...], w1_ref[...], preferred_element_type=jnp.float32)
    h = jnp.maximum(h + b1_ref[...], 0.0)                      # (TB, TH) f32

    # fc2 partial product accumulated into the f32 logits buffer.
    # Single f32->bf16 cast of the ReLU output on the bf16 path; no-op on f32.
    acc_ref[...] += jnp.dot(h.astype(w2_ref.dtype), w2_ref[...],
                            preferred_element_type=jnp.float32)

    @pl.when(h_idx == pl.num_programs(1) - 1)
    def _finalize():
        # b2 was padded with -1e30, so padded output classes drop out of the
        # softmax with no in-kernel mask.
        logits = acc_ref[...] + b2_ref[...]                    # (TB, D_out_p) f32
        m = jnp.max(logits, axis=1, keepdims=True)
        e = jnp.exp(logits - m)
        denom = jnp.sum(e, axis=1, keepdims=True)
        o_ref[...] = (e * pl.reciprocal(denom, approx=True)).astype(o_ref.dtype)


# ---------------------------------------------------------------------------
# One-time parameter preparation (padding / casting hoisted out of forward).
# ---------------------------------------------------------------------------
def prepare_mlp_params(w1, b1, w2, b2, *, use_bf16_matmul=True, block_b=512):
    d_in, h_size = w1.shape
    d_out = w2.shape[1]

    d_in_p = _round_up(d_in, 128)
    d_out_p = _round_up(d_out, 128)
    h_p0 = _round_up(h_size, 128)

    w_dtype = jnp.bfloat16 if use_bf16_matmul else jnp.float32
    wbytes = jnp.dtype(w_dtype).itemsize

    # Pick the hidden chunk TH (and padded H) so resident weights + buffers +
    # activation tiles fit in ~70% of this generation's VMEM.
    budget = int(0.70 * _vmem_capacity_bytes())
    n_chunks = 1
    while True:
        th = _round_up(_cdiv(h_p0, n_chunks), 128)
        h_pad = th * n_chunks
        n_wbuf = 1 if n_chunks == 1 else 2  # constant-index weights -> 1 buffer
        weight_bytes = n_wbuf * (d_in_p * th + th * d_out_p) * wbytes
        bias_bytes = n_wbuf * th * 4 + d_out_p * 4
        act_bytes = 2 * block_b * d_in_p * wbytes + 2 * block_b * d_out_p * 4
        scratch_bytes = block_b * d_out_p * 4 + block_b * th * 4
        total = weight_bytes + bias_bytes + act_bytes + scratch_bytes
        if total <= budget or th == 128:
            break
        n_chunks *= 2

    f32 = jnp.float32
    w1p = jnp.pad(w1.astype(w_dtype), ((0, d_in_p - d_in), (0, h_pad - h_size)))
    w2p = jnp.pad(w2.astype(w_dtype), ((0, h_pad - h_size), (0, d_out_p - d_out)))
    b1p = jnp.pad(b1.astype(f32).reshape(1, -1), ((0, 0), (0, h_pad - h_size)))
    # -1e30 sentinel in padded output classes (kept f32 at the add site).
    b2p = jnp.pad(b2.astype(f32).reshape(1, -1), ((0, 0), (0, d_out_p - d_out)),
                  constant_values=-1e30)

    return dict(w1=w1p, b1=b1p, w2=w2p, b2=b2p,
                d_in=d_in, h=h_size, d_out=d_out,
                d_in_p=d_in_p, h_pad=h_pad, d_out_p=d_out_p,
                th=th, n_h=n_chunks, use_bf16=use_bf16_matmul)


def _pick_batch_tile(batch: int, block_b: int, sub: int) -> int:
    if batch <= sub:
        return sub
    if batch <= block_b:
        # >= 2 batch grid steps so ("parallel", ...) can shard across v7x's 2 TCs.
        return _round_up(_cdiv(batch, 2), sub)
    n_tiles = _cdiv(batch, block_b)
    return _round_up(_cdiv(batch, n_tiles), sub)


# ---------------------------------------------------------------------------
# Forward: y = softmax(relu(x @ w1 + b1) @ w2 + b2, axis=1)
# ---------------------------------------------------------------------------
def mlp_forward_prepared(x, params, *, block_b=512):
    B, d_in = x.shape
    assert d_in == params["d_in"]
    d_in_p, d_out_p = params["d_in_p"], params["d_out_p"]
    th, n_h = params["th"], params["n_h"]
    use_bf16 = params["use_bf16"]

    x_dtype = jnp.bfloat16 if use_bf16 else jnp.float32
    sub = 16 if use_bf16 else 8          # sublane packing multiple for the x tile
    tb = _pick_batch_tile(B, block_b, sub)
    b_p = _round_up(B, tb)

    if x.dtype != x_dtype:
        x = x.astype(x_dtype)
    if (b_p != B) or (d_in_p != d_in):
        x = jnp.pad(x, ((0, b_p - B), (0, d_in_p - d_in)))

    # VMEM budget (no double counting; generation-aware cap).
    capacity = _vmem_capacity_bytes()
    wbytes = 2 if use_bf16 else 4
    n_wbuf = 1 if n_h == 1 else 2
    weight_bytes = (n_wbuf * (d_in_p * th + th * d_out_p) * wbytes
                    + n_wbuf * th * 4 + d_out_p * 4)
    act_bytes = 2 * tb * d_in_p * wbytes + 2 * tb * d_out_p * 4
    scratch_bytes = tb * d_out_p * 4 + tb * th * 4
    needed = weight_bytes + act_bytes + scratch_bytes
    vmem_limit = min(int(0.95 * capacity), max(16 << 20, int(1.5 * needed)))

    weights_resident = (n_h == 1)

    def run(single_buffer_constants: bool):
        def cspec(shape, index_map, constant):
            if constant and single_buffer_constants:
                return pl.BlockSpec(shape, index_map, pipeline_mode=pl.Buffered(1))
            return pl.BlockSpec(shape, index_map)

        grid_spec = pltpu.PrefetchScalarGridSpec(
            num_scalar_prefetch=0,
            grid=(b_p // tb, n_h),
            in_specs=[
                pl.BlockSpec((tb, d_in_p), lambda i, h: (i, 0)),               # x
                cspec((d_in_p, th), lambda i, h: (0, h), weights_resident),    # w1
                cspec((1, th), lambda i, h: (0, h), weights_resident),         # b1
                cspec((th, d_out_p), lambda i, h: (h, 0), weights_resident),   # w2
                cspec((1, d_out_p), lambda i, h: (0, 0), True),                # b2
            ],
            out_specs=pl.BlockSpec((tb, d_out_p), lambda i, h: (i, 0)),
            scratch_shapes=[pltpu.VMEM((tb, d_out_p), jnp.float32)],
        )
        return pl.pallas_call(
            mlp_kernel,
            out_shape=jax.ShapeDtypeStruct((b_p, d_out_p), jnp.float32),
            grid_spec=grid_spec,
            compiler_params=pltpu.CompilerParams(
                dimension_semantics=("parallel", "arbitrary"),
                vmem_limit_bytes=vmem_limit,
            ),
        )(x, params["w1"], params["b1"], params["w2"], params["b2"])

    try:
        out_padded = run(True)
    except Exception:
        # Fallback if this JAX build rejects single-buffered constant specs.
        out_padded = run(False)

    if (b_p != B) or (d_out_p != params["d_out"]):
        return out_padded[:B, :params["d_out"]]
    return out_padded


def mlp_forward(x, w1, b1, w2, b2, *, use_bf16_matmul=True, block_b=512):
    params = prepare_mlp_params(w1, b1, w2, b2,
                                use_bf16_matmul=use_bf16_matmul, block_b=block_b)
    return mlp_forward_prepared(x, params, block_b=block_b)


def init_linear_params(key, in_features, out_features):
    # Deterministic init mimicking nn.Linear default (uniform(-k, k), k=1/sqrt(in)).
    kw, kb = jax.random.split(key)
    bound = 1.0 / jnp.sqrt(jnp.float32(in_features))
    # Stored as (in, out) -> kernel computes x @ W.
    w = jax.random.uniform(kw, (in_features, out_features), jnp.float32,
                           minval=-bound, maxval=bound)
    b = jax.random.uniform(kb, (1, out_features), jnp.float32,
                           minval=-bound, maxval=bound)
    return w, b


if __name__ == "__main__":
    input_size, hidden_size, output_size = 16, 32, 8
    batch = 4

    key = jax.random.PRNGKey(0)
    kx, k1, k2 = jax.random.split(key, 3)

    x = jax.random.normal(kx, (batch, input_size), dtype=jnp.float32)
    w1, b1 = init_linear_params(k1, input_size, hidden_size)
    w2, b2 = init_linear_params(k2, hidden_size, output_size)

    # Pure-JAX reference of the forward semantics.
    h_ref = jnp.maximum(x @ w1 + b1, 0.0)
    ref = jax.nn.softmax(h_ref @ w2 + b2, axis=1)

    # Default path: bf16 MXU matmuls with f32 accumulation (loose tolerance).
    params_bf16 = prepare_mlp_params(w1, b1, w2, b2, use_bf16_matmul=True)
    out_bf16 = jax.block_until_ready(mlp_forward_prepared(x, params_bf16))
    assert out_bf16.shape == (batch, output_size)
    assert jnp.allclose(out_bf16, ref, atol=5e-2, rtol=5e-2), \
        float(jnp.max(jnp.abs(out_bf16 - ref)))

    # f32 opt-out path (approx reciprocal -> ~1e-3 tolerance).
    params_f32 = prepare_mlp_params(w1, b1, w2, b2, use_bf16_matmul=False)
    out_f32 = jax.block_until_ready(mlp_forward_prepared(x, params_f32))
    assert out_f32.shape == (batch, output_size)
    assert jnp.allclose(out_f32, ref, atol=2e-3, rtol=2e-3), \
        float(jnp.max(jnp.abs(out_f32 - ref)))

    print("KERNEL_OK")
</pallas_src>

<mosaic_0001>
module attributes {stable_mosaic.version = 11 : i64} {
  func.func @mlp_kernel(%arg0: i32, %arg1: i32, %arg2: memref<16x128xbf16, #tpu.memory_space<vmem>>, %arg3: memref<128x128xbf16, #tpu.memory_space<vmem>>, %arg4: memref<1x128xf32, #tpu.memory_space<vmem>>, %arg5: memref<128x128xbf16, #tpu.memory_space<vmem>>, %arg6: memref<1x128xf32, #tpu.memory_space<vmem>>, %arg7: memref<16x128xf32, #tpu.memory_space<vmem>>, %arg8: memref<16x128xf32, #tpu.memory_space<vmem>>) attributes {dimension_semantics = [#tpu.dimension_semantics<parallel>, #tpu.dimension_semantics<arbitrary>], iteration_bounds = array<i64: 1, 1>, scalar_prefetch = 0 : i64, scratch_operands = 1 : i64, tpu.core_type = #tpu.core_type<tc>, window_params = [{transform_indices = @transform_0, window_bounds = array<i64: 16, 128>}, {pipeline_mode = #tpu.pipeline_mode<synchronous>, transform_indices = @transform_1, window_bounds = array<i64: 128, 128>}, {pipeline_mode = #tpu.pipeline_mode<synchronous>, transform_indices = @transform_2, window_bounds = array<i64: 1, 128>}, {pipeline_mode = #tpu.pipeline_mode<synchronous>, transform_indices = @transform_3, window_bounds = array<i64: 128, 128>}, {pipeline_mode = #tpu.pipeline_mode<synchronous>, transform_indices = @transform_4, window_bounds = array<i64: 1, 128>}, {transform_indices = @transform_5, window_bounds = array<i64: 16, 128>}]} {
    %c0_i32 = arith.constant 0 : i32
    %0 = arith.cmpi eq, %arg1, %c0_i32 : i32
    %1 = arith.extui %0 : i1 to i32
    %c0_i32_0 = arith.constant 0 : i32
    %2 = arith.cmpi ne, %1, %c0_i32_0 : i32
    scf.if %2 {
      %cst_16 = arith.constant 0.000000e+00 : f32
      %20 = vector.broadcast %cst_16 : f32 to vector<16x128xf32>
      %c0_17 = arith.constant 0 : index
      %c0_18 = arith.constant 0 : index
      %21 = vector.load %arg8[%c0_17, %c0_18] : memref<16x128xf32, #tpu.memory_space<vmem>>, vector<16x128xf32>
      tpu.vector_store %arg8[%c0_17, %c0_18], %20 {strides = array<i32>} : memref<16x128xf32, #tpu.memory_space<vmem>>, vector<16x128xf32>,
    } else {
    }
    %c0 = arith.constant 0 : index
    %c0_1 = arith.constant 0 : index
    %3 = vector.load %arg2[%c0, %c0_1] : memref<16x128xbf16, #tpu.memory_space<vmem>>, vector<16x128xbf16>
    %c0_2 = arith.constant 0 : index
    %c0_3 = arith.constant 0 : index
    %4 = vector.load %arg3[%c0_2, %c0_3] : memref<128x128xbf16, #tpu.memory_space<vmem>>, vector<128x128xbf16>
    %cst = arith.constant dense<0.000000e+00> : vector<16x128xf32>
    %5 = tpu.matmul %3, %4, %cst {dimension_numbers = #tpu.dot_dimension_numbers<[1], [0], [0], [1], [0, 0, 1, 1], [], []>} : vector<16x128xbf16>, vector<128x128xbf16>, vector<16x128xf32> -> vector<16x128xf32>
    %c0_4 = arith.constant 0 : index
    %c0_5 = arith.constant 0 : index
    %6 = vector.load %arg4[%c0_4, %c0_5] : memref<1x128xf32, #tpu.memory_space<vmem>>, vector<1x128xf32>
    %7 = vector.broadcast %6 : vector<1x128xf32> to vector<16x128xf32>
    %8 = arith.addf %5, %7 : vector<16x128xf32>
    %cst_6 = arith.constant 0.000000e+00 : f32
    %9 = vector.broadcast %cst_6 : f32 to vector<16x128xf32>
    %10 = arith.maximumf %8, %9 : vector<16x128xf32>
    %c0_7 = arith.constant 0 : index
    %c0_8 = arith.constant 0 : index
    %11 = vector.load %arg8[%c0_7, %c0_8] : memref<16x128xf32, #tpu.memory_space<vmem>>, vector<16x128xf32>
    %12 = arith.truncf %10 : vector<16x128xf32> to vector<16x128xbf16>
    %c0_9 = arith.constant 0 : index
    %c0_10 = arith.constant 0 : index
    %13 = vector.load %arg5[%c0_9, %c0_10] : memref<128x128xbf16, #tpu.memory_space<vmem>>, vector<128x128xbf16>
    %cst_11 = arith.constant dense<0.000000e+00> : vector<16x128xf32>
    %14 = tpu.matmul %12, %13, %cst_11 {dimension_numbers = #tpu.dot_dimension_numbers<[1], [0], [0], [1], [0, 0, 1, 1], [], []>} : vector<16x128xbf16>, vector<128x128xbf16>, vector<16x128xf32> -> vector<16x128xf32>
    %15 = arith.addf %11, %14 : vector<16x128xf32>
    %c0_12 = arith.constant 0 : index
    %c0_13 = arith.constant 0 : index
    %16 = vector.load %arg8[%c0_12, %c0_13] : memref<16x128xf32, #tpu.memory_space<vmem>>, vector<16x128xf32>
    tpu.vector_store %arg8[%c0_12, %c0_13], %15 {strides = array<i32>} : memref<16x128xf32, #tpu.memory_space<vmem>>, vector<16x128xf32>,
    %c0_i32_14 = arith.constant 0 : i32
    %17 = arith.cmpi eq, %arg1, %c0_i32_14 : i32
    %18 = arith.extui %17 : i1 to i32
    %c0_i32_15 = arith.constant 0 : i32
    %19 = arith.cmpi ne, %18, %c0_i32_15 : i32
    scf.if %19 {
      %c0_16 = arith.constant 0 : index
      %c0_17 = arith.constant 0 : index
      %20 = vector.load %arg8[%c0_16, %c0_17] : memref<16x128xf32, #tpu.memory_space<vmem>>, vector<16x128xf32>
      %c0_18 = arith.constant 0 : index
      %c0_19 = arith.constant 0 : index
      %21 = vector.load %arg6[%c0_18, %c0_19] : memref<1x128xf32, #tpu.memory_space<vmem>>, vector<1x128xf32>
      %22 = vector.broadcast %21 : vector<1x128xf32> to vector<16x128xf32>
      %23 = arith.addf %20, %22 : vector<16x128xf32>
      %cst_20 = arith.constant dense<0xFF800000> : vector<16xf32>
      %24 = vector.multi_reduction <maximumf>, %23, %cst_20 [1] : vector<16x128xf32> to vector<16xf32>
      %25 = vector.shape_cast %24 : vector<16xf32> to vector<16x1xf32>
      %26 = vector.broadcast %25 : vector<16x1xf32> to vector<16x128xf32>
      %27 = arith.subf %23, %26 : vector<16x128xf32>
      %28 = math.exp %27 : vector<16x128xf32>
      %cst_21 = arith.constant dense<0.000000e+00> : vector<16xf32>
      %29 = vector.multi_reduction <add>, %28, %cst_21 [1] : vector<16x128xf32> to vector<16xf32>
      %30 = vector.shape_cast %29 : vector<16xf32> to vector<16x1xf32>
      %31 = tpu.reciprocal %30 {approx = true} : vector<16x1xf32> -> vector<16x1xf32>
      %32 = vector.broadcast %31 : vector<16x1xf32> to vector<16x128xf32>
      %33 = arith.mulf %28, %32 : vector<16x128xf32>
      %c0_22 = arith.constant 0 : index
      %c0_23 = arith.constant 0 : index
      %34 = vector.load %arg7[%c0_22, %c0_23] : memref<16x128xf32, #tpu.memory_space<vmem>>, vector<16x128xf32>
      tpu.vector_store %arg7[%c0_22, %c0_23], %33 {strides = array<i32>} : memref<16x128xf32, #tpu.memory_space<vmem>>, vector<16x128xf32>,
    } else {
    }
    return
  }
  func.func @transform_0(%arg0: i32, %arg1: i32) -> (i32, i32) {
    %c0_i32 = arith.constant 0 : i32
    %c0_i32_0 = arith.constant 0 : i32
    return %arg0, %c0_i32 : i32, i32
  }
  func.func @transform_1(%arg0: i32, %arg1: i32) -> (i32, i32) {
    %c0_i32 = arith.constant 0 : i32
    %c0_i32_0 = arith.constant 0 : i32
    return %c0_i32, %arg1 : i32, i32
  }
  func.func @transform_2(%arg0: i32, %arg1: i32) -> (i32, i32) {
    %c0_i32 = arith.constant 0 : i32
    %c0_i32_0 = arith.constant 0 : i32
    return %c0_i32, %arg1 : i32, i32
  }
  func.func @transform_3(%arg0: i32, %arg1: i32) -> (i32, i32) {
    %c0_i32 = arith.constant 0 : i32
    %c0_i32_0 = arith.constant 0 : i32
    return %arg1, %c0_i32 : i32, i32
  }
  func.func @transform_4(%arg0: i32, %arg1: i32) -> (i32, i32) {
    %c0_i32 = arith.constant 0 : i32
    %c0_i32_0 = arith.constant 0 : i32
    %c0_i32_1 = arith.constant 0 : i32
    return %c0_i32, %c0_i32_0 : i32, i32
  }
  func.func @transform_5(%arg0: i32, %arg1: i32) -> (i32, i32) {
    %c0_i32 = arith.constant 0 : i32
    %c0_i32_0 = arith.constant 0 : i32
    return %arg0, %c0_i32 : i32, i32
  }
}

module attributes {stable_mosaic.version = 11 : i64} {
  func.func @mlp_kernel(%arg0: i32, %arg1: i32, %arg2: memref<16x128xbf16, #tpu.memory_space<vmem>>, %arg3: memref<128x128xbf16, #tpu.memory_space<vmem>>, %arg4: memref<1x128xf32, #tpu.memory_space<vmem>>, %arg5: memref<128x128xbf16, #tpu.memory_space<vmem>>, %arg6: memref<1x128xf32, #tpu.memory_space<vmem>>, %arg7: memref<16x128xf32, #tpu.memory_space<vmem>>, %arg8: memref<16x128xf32, #tpu.memory_space<vmem>>) attributes {dimension_semantics = [#tpu.dimension_semantics<parallel>, #tpu.dimension_semantics<arbitrary>], iteration_bounds = array<i64: 1, 1>, scalar_prefetch = 0 : i64, scratch_operands = 1 : i64, tpu.core_type = #tpu.core_type<tc>, window_params = [{transform_indices = @transform_0, window_bounds = array<i64: 16, 128>}, {transform_indices = @transform_1, window_bounds = array<i64: 128, 128>}, {transform_indices = @transform_2, window_bounds = array<i64: 1, 128>}, {transform_indices = @transform_3, window_bounds = array<i64: 128, 128>}, {pipeline_mode = #tpu.pipeline_mode<synchronous>, transform_indices = @transform_4, window_bounds = array<i64: 1, 128>}, {transform_indices = @transform_5, window_bounds = array<i64: 16, 128>}]} {
    %c0_i32 = arith.constant 0 : i32
    %0 = arith.cmpi eq, %arg1, %c0_i32 : i32
    %1 = arith.extui %0 : i1 to i32
    %c0_i32_0 = arith.constant 0 : i32
    %2 = arith.cmpi ne, %1, %c0_i32_0 : i32
    scf.if %2 {
      %cst_16 = arith.constant 0.000000e+00 : f32
      %20 = vector.broadcast %cst_16 : f32 to vector<16x128xf32>
      %c0_17 = arith.constant 0 : index
      %c0_18 = arith.constant 0 : index
      %21 = vector.load %arg8[%c0_17, %c0_18] : memref<16x128xf32, #tpu.memory_space<vmem>>, vector<16x128xf32>
      tpu.vector_store %arg8[%c0_17, %c0_18], %20 {strides = array<i32>} : memref<16x128xf32, #tpu.memory_space<vmem>>, vector<16x128xf32>,
    } else {
    }
    %c0 = arith.constant 0 : index
    %c0_1 = arith.constant 0 : index
    %3 = vector.load %arg2[%c0, %c0_1] : memref<16x128xbf16, #tpu.memory_space<vmem>>, vector<16x128xbf16>
    %c0_2 = arith.constant 0 : index
    %c0_3 = arith.constant 0 : index
    %4 = vector.load %arg3[%c0_2, %c0_3] : memref<128x128xbf16, #tpu.memory_space<vmem>>, vector<128x128xbf16>
    %cst = arith.constant dense<0.000000e+00> : vector<16x128xf32>
    %5 = tpu.matmul %3, %4, %cst {dimension_numbers = #tpu.dot_dimension_numbers<[1], [0], [0], [1], [0, 0, 1, 1], [], []>} : vector<16x128xbf16>, vector<128x128xbf16>, vector<16x128xf32> -> vector<16x128xf32>
    %c0_4 = arith.constant 0 : index
    %c0_5 = arith.constant 0 : index
    %6 = vector.load %arg4[%c0_4, %c0_5] : memref<1x128xf32, #tpu.memory_space<vmem>>, vector<1x128xf32>
    %7 = vector.broadcast %6 : vector<1x128xf32> to vector<16x128xf32>
    %8 = arith.addf %5, %7 : vector<16x128xf32>
    %cst_6 = arith.constant 0.000000e+00 : f32
    %9 = vector.broadcast %cst_6 : f32 to vector<16x128xf32>
    %10 = arith.maximumf %8, %9 : vector<16x128xf32>
    %c0_7 = arith.constant 0 : index
    %c0_8 = arith.constant 0 : index
    %11 = vector.load %arg8[%c0_7, %c0_8] : memref<16x128xf32, #tpu.memory_space<vmem>>, vector<16x128xf32>
    %12 = arith.truncf %10 : vector<16x128xf32> to vector<16x128xbf16>
    %c0_9 = arith.constant 0 : index
    %c0_10 = arith.constant 0 : index
    %13 = vector.load %arg5[%c0_9, %c0_10] : memref<128x128xbf16, #tpu.memory_space<vmem>>, vector<128x128xbf16>
    %cst_11 = arith.constant dense<0.000000e+00> : vector<16x128xf32>
    %14 = tpu.matmul %12, %13, %cst_11 {dimension_numbers = #tpu.dot_dimension_numbers<[1], [0], [0], [1], [0, 0, 1, 1], [], []>} : vector<16x128xbf16>, vector<128x128xbf16>, vector<16x128xf32> -> vector<16x128xf32>
    %15 = arith.addf %11, %14 : vector<16x128xf32>
    %c0_12 = arith.constant 0 : index
    %c0_13 = arith.constant 0 : index
    %16 = vector.load %arg8[%c0_12, %c0_13] : memref<16x128xf32, #tpu.memory_space<vmem>>, vector<16x128xf32>
    tpu.vector_store %arg8[%c0_12, %c0_13], %15 {strides = array<i32>} : memref<16x128xf32, #tpu.memory_space<vmem>>, vector<16x128xf32>,
    %c0_i32_14 = arith.constant 0 : i32
    %17 = arith.cmpi eq, %arg1, %c0_i32_14 : i32
    %18 = arith.extui %17 : i1 to i32
    %c0_i32_15 = arith.constant 0 : i32
    %19 = arith.cmpi ne, %18, %c0_i32_15 : i32
    scf.if %19 {
      %c0_16 = arith.constant 0 : index
      %c0_17 = arith.constant 0 : index
      %20 = vector.load %arg8[%c0_16, %c0_17] : memref<16x128xf32, #tpu.memory_space<vmem>>, vector<16x128xf32>
      %c0_18 = arith.constant 0 : index
      %c0_19 = arith.constant 0 : index
      %21 = vector.load %arg6[%c0_18, %c0_19] : memref<1x128xf32, #tpu.memory_space<vmem>>, vector<1x128xf32>
      %22 = vector.broadcast %21 : vector<1x128xf32> to vector<16x128xf32>
      %23 = arith.addf %20, %22 : vector<16x128xf32>
      %cst_20 = arith.constant dense<0xFF800000> : vector<16xf32>
      %24 = vector.multi_reduction <maximumf>, %23, %cst_20 [1] : vector<16x128xf32> to vector<16xf32>
      %25 = vector.shape_cast %24 : vector<16xf32> to vector<16x1xf32>
      %26 = vector.broadcast %25 : vector<16x1xf32> to vector<16x128xf32>
      %27 = arith.subf %23, %26 : vector<16x128xf32>
      %28 = math.exp %27 : vector<16x128xf32>
      %cst_21 = arith.constant dense<0.000000e+00> : vector<16xf32>
      %29 = vector.multi_reduction <add>, %28, %cst_21 [1] : vector<16x128xf32> to vector<16xf32>
      %30 = vector.shape_cast %29 : vector<16xf32> to vector<16x1xf32>
      %31 = tpu.reciprocal %30 {approx = true} : vector<16x1xf32> -> vector<16x1xf32>
      %32 = vector.broadcast %31 : vector<16x1xf32> to vector<16x128xf32>
      %33 = arith.mulf %28, %32 : vector<16x128xf32>
      %c0_22 = arith.constant 0 : index
      %c0_23 = arith.constant 0 : index
      %34 = vector.load %arg7[%c0_22, %c0_23] : memref<16x128xf32, #tpu.memory_space<vmem>>, vector<16x128xf32>
      tpu.vector_store %arg7[%c0_22, %c0_23], %33 {strides = array<i32>} : memref<16x128xf32, #tpu.memory_space<vmem>>, vector<16x128xf32>,
    } else {
    }
    return
  }
  func.func @transform_0(%arg0: i32, %arg1: i32) -> (i32, i32) {
    %c0_i32 = arith.constant 0 : i32
    %c0_i32_0 = arith.constant 0 : i32
    return %arg0, %c0_i32 : i32, i32
  }
  func.func @transform_1(%arg0: i32, %arg1: i32) -> (i32, i32) {
    %c0_i32 = arith.constant 0 : i32
    %c0_i32_0 = arith.constant 0 : i32
    return %c0_i32, %arg1 : i32, i32
  }
  func.func @transform_2(%arg0: i32, %arg1: i32) -> (i32, i32) {
    %c0_i32 = arith.constant 0 : i32
    %c0_i32_0 = arith.constant 0 : i32
    return %c0_i32, %arg1 : i32, i32
  }
  func.func @transform_3(%arg0: i32, %arg1: i32) -> (i32, i32) {
    %c0_i32 = arith.constant 0 : i32
    %c0_i32_0 = arith.constant 0 : i32
    return %arg1, %c0_i32 : i32, i32
  }
  func.func @transform_4(%arg0: i32, %arg1: i32) -> (i32, i32) {
    %c0_i32 = arith.constant 0 : i32
    %c0_i32_0 = arith.constant 0 : i32
    %c0_i32_1 = arith.constant 0 : i32
    return %c0_i32, %c0_i32_0 : i32, i32
  }
  func.func @transform_5(%arg0: i32, %arg1: i32) -> (i32, i32) {
    %c0_i32 = arith.constant 0 : i32
    %c0_i32_0 = arith.constant 0 : i32
    return %arg0, %c0_i32 : i32, i32
  }
}

</mosaic_0001>

<bundles_post_ra>
// kernel: tpu_custom_call.1
= control target key start
LH: loop header
LB: loop body
LE: loop exit
PB: predicated region body
PF: predicated region fallthrough
CT: control target
= control target key end

     0   :  { %10 = vsyncpa [#allocation4], 0  ;;  %s671_s0 = inlined_call_operand.hbm [shape: bf16[16,128], index: 0, kind: input, shape index: {}]   ;;  %s672_s1 = inlined_call_operand.hbm [shape: bf16[128,128], index: 1, kind: input, shape index: {}]   ;;  %s673_s2 = inlined_call_operand.vmem [shape: f32[1,128], index: 2, kind: input, shape index: {}]   ;;  %s674_s3 = inlined_call_operand.hbm [shape: bf16[128,128], index: 3, kind: input, shape index: {}]   ;;  %s675_s4 = inlined_call_operand.vmem [shape: f32[1,128], index: 4, kind: input, shape index: {}]   ;;  %s676_s5 = inlined_call_operand.hbm [shape: f32[16,128], index: 5, kind: output, shape index: {}]  }
   0x1   :  { %11 = vsyncpa [#allocation7], 0 }
   0x2   :  { %12 = vsyncpa [#allocation5], 0  ;;  %s561_s18 = smov [#allocation6]   ;;  %s562_s20 = smov [#allocation3]  }
   0x3   :  { %s30_s19 = sshll.u32 %s561_s18, 4  ;;  %s18_s21 = sshll.u32 %s562_s20, 4  ;;  %s31_s19 = int_to_ptr.vmem [resolvable:$true] %s30_s19  ;;  %s601_s21 = int_to_ptr.vmem [resolvable:$true] %s18_s21 }
   0x4   :  { %s467_s24 = scalar_lea.hbm %s672_s1, 1024 }
   0x5   :  { %p468_p0 = scmp.ne.s32.totalorder %s672_s1, %s467_s24  ;;  %p471_p1 = scmp.lt.u32.totalorder %s467_s24, %s672_s1 }
   0x7   :  { %p473_p2 = pnand %p471_p1, %p468_p0 }
   0x9   :  { %476 = shalt.err (!%p473_p2)
}
   0xa   :  { %s477_s29 = scalar_lea.vmem %s31_s19, 1024  ;;  %p482_p4 = scmp.lt.s32.totalorder %s31_s19, %s31_s19 }
   0xb   :  { %p478_p3 = scmp.ne.s32.totalorder %s31_s19, %s477_s29  ;;  %p483_p5 = scmp.lt.s32.totalorder %s477_s29, %s477_s29 }
   0xd   :  { %p484_p6 = por %p483_p5, %p482_p4 }
   0xf   :  { %p485_p7 = pnand %p484_p6, %p478_p3 }
  0x11   :  { %488 = shalt.err (!%p485_p7)
}
  0x12   :  { %s563_s30 = smov 64   ;;  %s564_s6 = smov 4  }
  0x13   :  { %36 = dma.hbm_to_vmem [thread:$0]  %s672_s1, 1024, %s31_s19, [#allocation7], %s563_s30, %s563_s30, %s564_s6  }
  0x14   :  { %s489_s11 = scalar_lea.hbm %s671_s0, 128 }
  0x15   :  { %p490_p8 = scmp.ne.s32.totalorder %s671_s0, %s489_s11  ;;  %p493_p9 = scmp.lt.u32.totalorder %s489_s11, %s671_s0 }
  0x17   :  { %p495_p10 = pnand %p493_p9, %p490_p8 }
  0x19   :  { %498 = shalt.err (!%p495_p10)
}
  0x1a   :  { %s499_s16 = scalar_lea.vmem %s601_s21, 128  ;;  %p504_p12 = scmp.lt.s32.totalorder %s601_s21, %s601_s21 }
  0x1b   :  { %p500_p11 = scmp.ne.s32.totalorder %s601_s21, %s499_s16  ;;  %p505_p13 = scmp.lt.s32.totalorder %s499_s16, %s499_s16 }
  0x1d   :  { %p506_p0 = por %p505_p13, %p504_p12 }
  0x1f   :  { %p507_p1 = pnand %p506_p0, %p500_p11 }
  0x21   :  { %510 = shalt.err (!%p507_p1)
}
  0x22   :  { %24 = dma.hbm_to_vmem [thread:$0]  %s671_s0, 128, %s601_s21, [#allocation4], %s563_s30, %s563_s30, %s564_s6  }
  0x23   :  { %s565_s18 = smov [#allocation8]   ;;  %s511_s23 = scalar_lea.hbm %s674_s3, 1024 }
  0x24   :  { %s44_s19 = sshll.u32 %s565_s18, 4  ;;  %p512_p2 = scmp.ne.s32.totalorder %s674_s3, %s511_s23  ;;  %s45_s19 = int_to_ptr.vmem [resolvable:$true] %s44_s19 }
  0x25   :  { %p515_p3 = scmp.lt.u32.totalorder %s511_s23, %s674_s3 }
  0x27   :  { %p517_p4 = pnand %p515_p3, %p512_p2 }
  0x29   :  { %520 = shalt.err (!%p517_p4)
}
  0x2a   :  { %s521_s28 = scalar_lea.vmem %s45_s19, 1024  ;;  %p526_p6 = scmp.lt.s32.totalorder %s45_s19, %s45_s19 }
  0x2b   :  { %p522_p5 = scmp.ne.s32.totalorder %s45_s19, %s521_s28  ;;  %p527_p7 = scmp.lt.s32.totalorder %s521_s28, %s521_s28 }
  0x2d   :  { %p528_p8 = por %p527_p7, %p526_p6 }
  0x2f   :  { %p529_p9 = pnand %p528_p8, %p522_p5 }
  0x31   :  { %532 = shalt.err (!%p529_p9)
}
  0x32   :  { %50 = dma.hbm_to_vmem [thread:$0]  %s674_s3, 1024, %s45_s19, [#allocation7], %s563_s30, %s563_s30, %s564_s6  }
  0x33   :  { %555 = dma.done.wait [#allocation4], 128  }
  0x34   :  { %556 = vsyncadd [#allocation4], 4294967168 }
  0x35   :  { %557 = dma.done.wait [#allocation7], 2048  }
  0x36   :  { %558 = vsyncadd [#allocation7], 4294965248  ;;  %v566_v0 = vmov 0.0   ;;  %vm567_vm0 = vmmov 0   ;;  %v442_v1 = vld [vmem:[#allocation6] sm:$0xff]   ;;  %v443_v2 = vld [vmem:[#allocation6 + $0x8] sm:$0xff]  }
  0x37   :  { %392 = vmatprep.subr.bf16.mxu0 %v566_v0  ;;  %408 = vmatprep.mubr.msk.bf16.mxu0 %vm567_vm0, %v566_v0  ;;  %v444_v3 = vld [vmem:[#allocation6 + $0x10] sm:$0xff]   ;;  %v451_v4 = vld [vmem:[#allocation8] sm:$0xff]   ;;  %v445_v5 = vld [vmem:[#allocation6 + $0x18] sm:$0xff]  }
  0x38   :  { %412 = vmatprep.subr.bf16.mxu1 %v566_v0  ;;  %428 = vmatprep.mubr.msk.bf16.mxu1 %vm567_vm0, %v566_v0  ;;  %v452_v6 = vld [vmem:[#allocation8 + $0x8] sm:$0xff]   ;;  %v446_v7 = vld [vmem:[#allocation6 + $0x20] sm:$0xff]   ;;  %v453_v8 = vld [vmem:[#allocation8 + $0x10] sm:$0xff]  }
  0x39   :  { %393 = vmatpush3.bf16.msra.mxu0 %v442_v1  ;;  %413 = vmatpush3.bf16.msra.mxu1 %v451_v4  ;;  %v447_v9 = vld [vmem:[#allocation6 + $0x28] sm:$0xff]   ;;  %v454_v10 = vld [vmem:[#allocation8 + $0x18] sm:$0xff]   ;;  %v448_v11 = vld [vmem:[#allocation6 + $0x30] sm:$0xff]  }
  0x3a   :  { %394 = vmatprep.subr.bf16.mxu0 %v566_v0  ;;  %414 = vmatprep.subr.bf16.mxu1 %v566_v0  ;;  %v455_v12 = vld [vmem:[#allocation8 + $0x20] sm:$0xff]   ;;  %v449_v13 = vld [vmem:[#allocation6 + $0x38] sm:$0xff]   ;;  %v456_v14 = vld [vmem:[#allocation8 + $0x28] sm:$0xff]  }
  0x3b   :  { %v450_v15 = vld [vmem:[#allocation3] sm:$0xff]   ;;  %v457_v16 = vld [vmem:[#allocation8 + $0x30] sm:$0xff]  }
  0x3c   :  { %v458_v17 = vld [vmem:[#allocation8 + $0x38] sm:$0xff]  }
  0x3d   :  { %395 = vmatpush3.bf16.msra.mxu0 %v443_v2  ;;  %415 = vmatpush3.bf16.msra.mxu1 %v452_v6  ;;  %v355_v18 = vld [vmem:[%s673_s2] ss:$0 sm:$0xff]  ;;  %s568_s2 = smov [#allocation9]  }
  0x3e   :  { %396 = vmatprep.subr.bf16.mxu0 %v566_v0  ;;  %416 = vmatprep.subr.bf16.mxu1 %v566_v0  ;;  %v373_v28 = vld [vmem:[%s675_s4] ss:$0 sm:$0xff]  ;;  %s342_s4 = sshll.u32 %s568_s2, 4  ;;  %s343_s4 = int_to_ptr.vmem [resolvable:$true] %s342_s4 }
  0x3f   :  { %s533_s7 = scalar_lea.vmem %s343_s4, 256  ;;  %p538_p11 = scmp.lt.s32.totalorder %s343_s4, %s343_s4 }
  0x40   :  { %p534_p10 = scmp.ne.s32.totalorder %s343_s4, %s533_s7  ;;  %p539_p12 = scmp.lt.s32.totalorder %s533_s7, %s533_s7 }
  0x41   :  { %397 = vmatpush3.bf16.msra.mxu0 %v444_v3  ;;  %417 = vmatpush3.bf16.msra.mxu1 %v453_v8 }
  0x42   :  { %398 = vmatprep.subr.bf16.mxu0 %v566_v0  ;;  %418 = vmatprep.subr.bf16.mxu1 %v566_v0  ;;  %p540_p13 = por %p539_p12, %p538_p11 }
  0x44   :  { %p541_p0 = pnand %p540_p13, %p534_p10 }
  0x45   :  { %399 = vmatpush3.bf16.msra.mxu0 %v445_v5  ;;  %419 = vmatpush3.bf16.msra.mxu1 %v454_v10 }
  0x46   :  { %400 = vmatprep.subr.bf16.mxu0 %v566_v0  ;;  %420 = vmatprep.subr.bf16.mxu1 %v566_v0 }
  0x49   :  { %401 = vmatpush3.bf16.msra.mxu0 %v446_v7  ;;  %421 = vmatpush3.bf16.msra.mxu1 %v455_v12 }
  0x4a   :  { %402 = vmatprep.subr.bf16.mxu0 %v566_v0  ;;  %422 = vmatprep.subr.bf16.mxu1 %v566_v0 }
  0x4d   :  { %403 = vmatpush3.bf16.msra.mxu0 %v447_v9  ;;  %423 = vmatpush3.bf16.msra.mxu1 %v456_v14 }
  0x4e   :  { %404 = vmatprep.subr.bf16.mxu0 %v566_v0  ;;  %424 = vmatprep.subr.bf16.mxu1 %v566_v0 }
  0x51   :  { %405 = vmatpush3.bf16.msra.mxu0 %v448_v11  ;;  %425 = vmatpush3.bf16.msra.mxu1 %v457_v16 }
  0x52   :  { %406 = vmatprep.subr.bf16.mxu0 %v566_v0  ;;  %426 = vmatprep.subr.bf16.mxu1 %v566_v0 }
  0x55   :  { %407 = vmatpush3.bf16.msra.mxu0 %v449_v13  ;;  %427 = vmatpush3.bf16.msra.mxu1 %v458_v17 }
  0x58   :  { %409 = vmatmul.mubr.bf16.vlgmr.msra.gmra.mrb[0].mxu0 %v450_v15 }
 0x12b   :  { %v182_v19 = vpop.f32.mrb[0].mxu0 }
 0x12c   :  { %v183_v20 = vadd.f32 %v355_v18, %v182_v19  ;;  %v410_v21 = vpop.f32.mrb[1].mxu0 }
 0x12d   :  { %v185_v22 = vpop.f32.mrb[2].mxu0 }
 0x12e   :  { %v186_v23 = vadd.f32 %v355_v18, %v185_v22  ;;  %v411_v24 = vpop.f32.mrb[3].mxu0  ;;  %v189_v25 = vmax.f32 %v183_v20, 0.0 }
 0x130   :  { %v190_v26 = vmax.f32 %v186_v23, 0.0 }
 0x132   :  { %v193_v27 = vpack.c.bf16 %v190_v26, %v189_v25 }
 0x134   :  { %429 = vmatmul.mubr.bf16.vlgmr.msra.gmra.mrb[0].mxu1 %v193_v27 }
 0x207   :  { %v292_v29 = vpop.f32.mrb[0].mxu1 }
 0x208   :  { %v315_v30 = vadd.f32 %v373_v28, %v292_v29  ;;  %v430_v31 = vpop.f32.mrb[1].mxu1 }
 0x209   :  { %v295_v32 = vpop.f32.mrb[2].mxu1 }
 0x20a   :  { %317 = vmax.xlane.f32.xlu0 %v315_v30  ;;  %v431_v33 = vpop.f32.mrb[3].mxu1  ;;  %v316_v34 = vadd.f32 %v373_v28, %v295_v32 }
 0x20e   :  { %319 = vmax.xlane.f32.xlu0 %v316_v34 }
 0x297   :  { %v318_v35 = vpop.xlane.xlu0 %317 }
 0x298   :  { %v321_v36 = vsub.f32 %v315_v30, %v318_v35 }
 0x29a   :  { %v323_v37 = vmul.f32 1.442695, %v321_v36 }
 0x29b   :  { %v320_v38 = vpop.xlane.xlu0 %319 }
 0x29c   :  { %459 = vpow2.f32 %v323_v37  ;;  %v322_v39 = vsub.f32 %v316_v34, %v320_v38 }
 0x29e   :  { %v325_v40 = vmul.f32 1.442695, %v322_v39 }
 0x2a0   :  { %461 = vpow2.f32 %v325_v40 }
 0x2a6   :  { %v460_v41 = vpop.eup %459 }
 0x2a7   :  { %327 = vadd.xlane.f32.xlu1 %v460_v41 }
 0x2aa   :  { %v462_v42 = vpop.eup %461 }
 0x2ab   :  { %329 = vadd.xlane.f32.xlu1 %v462_v42 }
 0x334   :  { %v328_v43 = vpop.xlane.xlu1 %327 }
 0x335   :  { %463 = vrcp.f32 %v328_v43 }
 0x338   :  { %v330_v44 = vpop.xlane.xlu1 %329 }
 0x339   :  { %465 = vrcp.f32 %v330_v44 }
 0x33f   :  { %v464_v45 = vpop.eup %463 }
 0x340   :  { %v333_v46 = vmul.f32 %v464_v45, %v460_v41 }
 0x342   :  { %335 = vst [vmem:[#allocation9] sm:$0xff] %v333_v46 }
 0x343   :  { %v466_v47 = vpop.eup %465 }
 0x344   :  { %v334_v48 = vmul.f32 %v466_v47, %v462_v42 }
 0x346   :  { %336 = vst [vmem:[#allocation9 + $0x8] sm:$0xff] %v334_v48 }
 0x347   :  { %544 = shalt.err (!%p541_p0)
}
 0x348   :  { %s545_s10 = scalar_lea.hbm %s676_s5, 256 }
 0x349   :  { %p546_p1 = scmp.ne.s32.totalorder %s676_s5, %s545_s10  ;;  %p549_p2 = scmp.lt.u32.totalorder %s545_s10, %s676_s5 }
 0x34b   :  { %p551_p3 = pnand %p549_p2, %p546_p1 }
 0x34d   :  { %554 = shalt.err (!%p551_p3)
}
 0x34e   :  { %s569_s15 = smov 128   ;;  %s570_s16 = smov 8  }
 0x34f   :  { %348 = dma.vmem_to_hbm [thread:$0]  %s343_s4, 256, %s676_s5, [#allocation5], %s569_s15, %s569_s15, %s570_s16  }
 0x350   :  { %559 = dma.done.wait [#allocation5], 256  }
 0x351   :  { %560 = vsyncadd [#allocation5], 4294967040 }
 0x352   :  { %352 = vsyncpa [#allocation4], 1 }
 0x353   :  { %353 = vsyncpa [#allocation7], 1 }
 0x354   :  { %354 = vsyncpa [#allocation5], 1 }

// kernel: tpu_custom_call.1
= control target key start
LH: loop header
LB: loop body
LE: loop exit
PB: predicated region body
PF: predicated region fallthrough
CT: control target
= control target key end

     0   :  { %10 = vsyncpa [#allocation4], 0  ;;  %s671_s0 = inlined_call_operand.hbm [shape: bf16[16,128], index: 0, kind: input, shape index: {}]   ;;  %s672_s1 = inlined_call_operand.hbm [shape: bf16[128,128], index: 1, kind: input, shape index: {}]   ;;  %s673_s2 = inlined_call_operand.vmem [shape: f32[1,128], index: 2, kind: input, shape index: {}]   ;;  %s674_s3 = inlined_call_operand.hbm [shape: bf16[128,128], index: 3, kind: input, shape index: {}]   ;;  %s675_s4 = inlined_call_operand.vmem [shape: f32[1,128], index: 4, kind: input, shape index: {}]   ;;  %s676_s5 = inlined_call_operand.hbm [shape: f32[16,128], index: 5, kind: output, shape index: {}]  }
   0x1   :  { %11 = vsyncpa [#allocation7], 0 }
   0x2   :  { %12 = vsyncpa [#allocation5], 0  ;;  %s561_s18 = smov [#allocation6]   ;;  %s562_s20 = smov [#allocation3]  }
   0x3   :  { %s30_s19 = sshll.u32 %s561_s18, 4  ;;  %s18_s21 = sshll.u32 %s562_s20, 4  ;;  %s31_s19 = int_to_ptr.vmem [resolvable:$true] %s30_s19  ;;  %s601_s21 = int_to_ptr.vmem [resolvable:$true] %s18_s21 }
   0x4   :  { %s467_s24 = scalar_lea.hbm %s672_s1, 1024 }
   0x5   :  { %p468_p0 = scmp.ne.s32.totalorder %s672_s1, %s467_s24  ;;  %p471_p1 = scmp.lt.u32.totalorder %s467_s24, %s672_s1 }
   0x7   :  { %p473_p2 = pnand %p471_p1, %p468_p0 }
   0x9   :  { %476 = shalt.err (!%p473_p2)
}
   0xa   :  { %s477_s29 = scalar_lea.vmem %s31_s19, 1024  ;;  %p482_p4 = scmp.lt.s32.totalorder %s31_s19, %s31_s19 }
   0xb   :  { %p478_p3 = scmp.ne.s32.totalorder %s31_s19, %s477_s29  ;;  %p483_p5 = scmp.lt.s32.totalorder %s477_s29, %s477_s29 }
   0xd   :  { %p484_p6 = por %p483_p5, %p482_p4 }
   0xf   :  { %p485_p7 = pnand %p484_p6, %p478_p3 }
  0x11   :  { %488 = shalt.err (!%p485_p7)
}
  0x12   :  { %s563_s30 = smov 64   ;;  %s564_s6 = smov 4  }
  0x13   :  { %36 = dma.hbm_to_vmem [thread:$0]  %s672_s1, 1024, %s31_s19, [#allocation7], %s563_s30, %s563_s30, %s564_s6  }
  0x14   :  { %s489_s11 = scalar_lea.hbm %s671_s0, 128 }
  0x15   :  { %p490_p8 = scmp.ne.s32.totalorder %s671_s0, %s489_s11  ;;  %p493_p9 = scmp.lt.u32.totalorder %s489_s11, %s671_s0 }
  0x17   :  { %p495_p10 = pnand %p493_p9, %p490_p8 }
  0x19   :  { %498 = shalt.err (!%p495_p10)
}
  0x1a   :  { %s499_s16 = scalar_lea.vmem %s601_s21, 128  ;;  %p504_p12 = scmp.lt.s32.totalorder %s601_s21, %s601_s21 }
  0x1b   :  { %p500_p11 = scmp.ne.s32.totalorder %s601_s21, %s499_s16  ;;  %p505_p13 = scmp.lt.s32.totalorder %s499_s16, %s499_s16 }
  0x1d   :  { %p506_p0 = por %p505_p13, %p504_p12 }
  0x1f   :  { %p507_p1 = pnand %p506_p0, %p500_p11 }
  0x21   :  { %510 = shalt.err (!%p507_p1)
}
  0x22   :  { %24 = dma.hbm_to_vmem [thread:$0]  %s671_s0, 128, %s601_s21, [#allocation4], %s563_s30, %s563_s30, %s564_s6  }
  0x23   :  { %s565_s18 = smov [#allocation8]   ;;  %s511_s23 = scalar_lea.hbm %s674_s3, 1024 }
  0x24   :  { %s44_s19 = sshll.u32 %s565_s18, 4  ;;  %p512_p2 = scmp.ne.s32.totalorder %s674_s3, %s511_s23  ;;  %s45_s19 = int_to_ptr.vmem [resolvable:$true] %s44_s19 }
  0x25   :  { %p515_p3 = scmp.lt.u32.totalorder %s511_s23, %s674_s3 }
  0x27   :  { %p517_p4 = pnand %p515_p3, %p512_p2 }
  0x29   :  { %520 = shalt.err (!%p517_p4)
}
  0x2a   :  { %s521_s28 = scalar_lea.vmem %s45_s19, 1024  ;;  %p526_p6 = scmp.lt.s32.totalorder %s45_s19, %s45_s19 }
  0x2b   :  { %p522_p5 = scmp.ne.s32.totalorder %s45_s19, %s521_s28  ;;  %p527_p7 = scmp.lt.s32.totalorder %s521_s28, %s521_s28 }
  0x2d   :  { %p528_p8 = por %p527_p7, %p526_p6 }
  0x2f   :  { %p529_p9 = pnand %p528_p8, %p522_p5 }
  0x31   :  { %532 = shalt.err (!%p529_p9)
}
  0x32   :  { %50 = dma.hbm_to_vmem [thread:$0]  %s674_s3, 1024, %s45_s19, [#allocation7], %s563_s30, %s563_s30, %s564_s6  }
  0x33   :  { %555 = dma.done.wait [#allocation4], 128  }
  0x34   :  { %556 = vsyncadd [#allocation4], 4294967168 }
  0x35   :  { %557 = dma.done.wait [#allocation7], 2048  }
  0x36   :  { %558 = vsyncadd [#allocation7], 4294965248  ;;  %v566_v0 = vmov 0.0   ;;  %vm567_vm0 = vmmov 0   ;;  %v442_v1 = vld [vmem:[#allocation6] sm:$0xff]   ;;  %v443_v2 = vld [vmem:[#allocation6 + $0x8] sm:$0xff]  }
  0x37   :  { %392 = vmatprep.subr.bf16.mxu0 %v566_v0  ;;  %408 = vmatprep.mubr.msk.bf16.mxu0 %vm567_vm0, %v566_v0  ;;  %v444_v3 = vld [vmem:[#allocation6 + $0x10] sm:$0xff]   ;;  %v451_v4 = vld [vmem:[#allocation8] sm:$0xff]   ;;  %v445_v5 = vld [vmem:[#allocation6 + $0x18] sm:$0xff]  }
  0x38   :  { %412 = vmatprep.subr.bf16.mxu1 %v566_v0  ;;  %428 = vmatprep.mubr.msk.bf16.mxu1 %vm567_vm0, %v566_v0  ;;  %v452_v6 = vld [vmem:[#allocation8 + $0x8] sm:$0xff]   ;;  %v446_v7 = vld [vmem:[#allocation6 + $0x20] sm:$0xff]   ;;  %v453_v8 = vld [vmem:[#allocation8 + $0x10] sm:$0xff]  }
  0x39   :  { %393 = vmatpush3.bf16.msra.mxu0 %v442_v1  ;;  %413 = vmatpush3.bf16.msra.mxu1 %v451_v4  ;;  %v447_v9 = vld [vmem:[#allocation6 + $0x28] sm:$0xff]   ;;  %v454_v10 = vld [vmem:[#allocation8 + $0x18] sm:$0xff]   ;;  %v448_v11 = vld [vmem:[#allocation6 + $0x30] sm:$0xff]  }
  0x3a   :  { %394 = vmatprep.subr.bf16.mxu0 %v566_v0  ;;  %414 = vmatprep.subr.bf16.mxu1 %v566_v0  ;;  %v455_v12 = vld [vmem:[#allocation8 + $0x20] sm:$0xff]   ;;  %v449_v13 = vld [vmem:[#allocation6 + $0x38] sm:$0xff]   ;;  %v456_v14 = vld [vmem:[#allocation8 + $0x28] sm:$0xff]  }
  0x3b   :  { %v450_v15 = vld [vmem:[#allocation3] sm:$0xff]   ;;  %v457_v16 = vld [vmem:[#allocation8 + $0x30] sm:$0xff]  }
  0x3c   :  { %v458_v17 = vld [vmem:[#allocation8 + $0x38] sm:$0xff]  }
  0x3d   :  { %395 = vmatpush3.bf16.msra.mxu0 %v443_v2  ;;  %415 = vmatpush3.bf16.msra.mxu1 %v452_v6  ;;  %v355_v18 = vld [vmem:[%s673_s2] ss:$0 sm:$0xff]  ;;  %s568_s2 = smov [#allocation9]  }
  0x3e   :  { %396 = vmatprep.subr.bf16.mxu0 %v566_v0  ;;  %416 = vmatprep.subr.bf16.mxu1 %v566_v0  ;;  %v373_v28 = vld [vmem:[%s675_s4] ss:$0 sm:$0xff]  ;;  %s342_s4 = sshll.u32 %s568_s2, 4  ;;  %s343_s4 = int_to_ptr.vmem [resolvable:$true] %s342_s4 }
  0x3f   :  { %s533_s7 = scalar_lea.vmem %s343_s4, 256  ;;  %p538_p11 = scmp.lt.s32.totalorder %s343_s4, %s343_s4 }
  0x40   :  { %p534_p10 = scmp.ne.s32.totalorder %s343_s4, %s533_s7  ;;  %p539_p12 = scmp.lt.s32.totalorder %s533_s7, %s533_s7 }
  0x41   :  { %397 = vmatpush3.bf16.msra.mxu0 %v444_v3  ;;  %417 = vmatpush3.bf16.msra.mxu1 %v453_v8 }
  0x42   :  { %398 = vmatprep.subr.bf16.mxu0 %v566_v0  ;;  %418 = vmatprep.subr.bf16.mxu1 %v566_v0  ;;  %p540_p13 = por %p539_p12, %p538_p11 }
  0x44   :  { %p541_p0 = pnand %p540_p13, %p534_p10 }
  0x45   :  { %399 = vmatpush3.bf16.msra.mxu0 %v445_v5  ;;  %419 = vmatpush3.bf16.msra.mxu1 %v454_v10 }
  0x46   :  { %400 = vmatprep.subr.bf16.mxu0 %v566_v0  ;;  %420 = vmatprep.subr.bf16.mxu1 %v566_v0 }
  0x49   :  { %401 = vmatpush3.bf16.msra.mxu0 %v446_v7  ;;  %421 = vmatpush3.bf16.msra.mxu1 %v455_v12 }
  0x4a   :  { %402 = vmatprep.subr.bf16.mxu0 %v566_v0  ;;  %422 = vmatprep.subr.bf16.mxu1 %v566_v0 }
  0x4d   :  { %403 = vmatpush3.bf16.msra.mxu0 %v447_v9  ;;  %423 = vmatpush3.bf16.msra.mxu1 %v456_v14 }
  0x4e   :  { %404 = vmatprep.subr.bf16.mxu0 %v566_v0  ;;  %424 = vmatprep.subr.bf16.mxu1 %v566_v0 }
  0x51   :  { %405 = vmatpush3.bf16.msra.mxu0 %v448_v11  ;;  %425 = vmatpush3.bf16.msra.mxu1 %v457_v16 }
  0x52   :  { %406 = vmatprep.subr.bf16.mxu0 %v566_v0  ;;  %426 = vmatprep.subr.bf16.mxu1 %v566_v0 }
  0x55   :  { %407 = vmatpush3.bf16.msra.mxu0 %v449_v13  ;;  %427 = vmatpush3.bf16.msra.mxu1 %v458_v17 }
  0x58   :  { %409 = vmatmul.mubr.bf16.vlgmr.msra.gmra.mrb[0].mxu0 %v450_v15 }
 0x12b   :  { %v182_v19 = vpop.f32.mrb[0].mxu0 }
 0x12c   :  { %v183_v20 = vadd.f32 %v355_v18, %v182_v19  ;;  %v410_v21 = vpop.f32.mrb[1].mxu0 }
 0x12d   :  { %v185_v22 = vpop.f32.mrb[2].mxu0 }
 0x12e   :  { %v186_v23 = vadd.f32 %v355_v18, %v185_v22  ;;  %v411_v24 = vpop.f32.mrb[3].mxu0  ;;  %v189_v25 = vmax.f32 %v183_v20, 0.0 }
 0x130   :  { %v190_v26 = vmax.f32 %v186_v23, 0.0 }
 0x132   :  { %v193_v27 = vpack.c.bf16 %v190_v26, %v189_v25 }
 0x134   :  { %429 = vmatmul.mubr.bf16.vlgmr.msra.gmra.mrb[0].mxu1 %v193_v27 }
 0x207   :  { %v292_v29 = vpop.f32.mrb[0].mxu1 }
 0x208   :  { %v315_v30 = vadd.f32 %v373_v28, %v292_v29  ;;  %v430_v31 = vpop.f32.mrb[1].mxu1 }
 0x209   :  { %v295_v32 = vpop.f32.mrb[2].mxu1 }
 0x20a   :  { %317 = vmax.xlane.f32.xlu0 %v315_v30  ;;  %v431_v33 = vpop.f32.mrb[3].mxu1  ;;  %v316_v34 = vadd.f32 %v373_v28, %v295_v32 }
 0x20e   :  { %319 = vmax.xlane.f32.xlu0 %v316_v34 }
 0x297   :  { %v318_v35 = vpop.xlane.xlu0 %317 }
 0x298   :  { %v321_v36 = vsub.f32 %v315_v30, %v318_v35 }
 0x29a   :  { %v323_v37 = vmul.f32 1.442695, %v321_v36 }
 0x29b   :  { %v320_v38 = vpop.xlane.xlu0 %319 }
 0x29c   :  { %459 = vpow2.f32 %v323_v37  ;;  %v322_v39 = vsub.f32 %v316_v34, %v320_v38 }
 0x29e   :  { %v325_v40 = vmul.f32 1.442695, %v322_v39 }
 0x2a0   :  { %461 = vpow2.f32 %v325_v40 }
 0x2a6   :  { %v460_v41 = vpop.eup %459 }
 0x2a7   :  { %327 = vadd.xlane.f32.xlu1 %v460_v41 }
 0x2aa   :  { %v462_v42 = vpop.eup %461 }
 0x2ab   :  { %329 = vadd.xlane.f32.xlu1 %v462_v42 }
 0x334   :  { %v328_v43 = vpop.xlane.xlu1 %327 }
 0x335   :  { %463 = vrcp.f32 %v328_v43 }
 0x338   :  { %v330_v44 = vpop.xlane.xlu1 %329 }
 0x339   :  { %465 = vrcp.f32 %v330_v44 }
 0x33f   :  { %v464_v45 = vpop.eup %463 }
 0x340   :  { %v333_v46 = vmul.f32 %v464_v45, %v460_v41 }
 0x342   :  { %335 = vst [vmem:[#allocation9] sm:$0xff] %v333_v46 }
 0x343   :  { %v466_v47 = vpop.eup %465 }
 0x344   :  { %v334_v48 = vmul.f32 %v466_v47, %v462_v42 }
 0x346   :  { %336 = vst [vmem:[#allocation9 + $0x8] sm:$0xff] %v334_v48 }
 0x347   :  { %544 = shalt.err (!%p541_p0)
}
 0x348   :  { %s545_s10 = scalar_lea.hbm %s676_s5, 256 }
 0x349   :  { %p546_p1 = scmp.ne.s32.totalorder %s676_s5, %s545_s10  ;;  %p549_p2 = scmp.lt.u32.totalorder %s545_s10, %s676_s5 }
 0x34b   :  { %p551_p3 = pnand %p549_p2, %p546_p1 }
 0x34d   :  { %554 = shalt.err (!%p551_p3)
}
 0x34e   :  { %s569_s15 = smov 128   ;;  %s570_s16 = smov 8  }
 0x34f   :  { %348 = dma.vmem_to_hbm [thread:$0]  %s343_s4, 256, %s676_s5, [#allocation5], %s569_s15, %s569_s15, %s570_s16  }
 0x350   :  { %559 = dma.done.wait [#allocation5], 256  }
 0x351   :  { %560 = vsyncadd [#allocation5], 4294967040 }
 0x352   :  { %352 = vsyncpa [#allocation4], 1 }
 0x353   :  { %353 = vsyncpa [#allocation7], 1 }
 0x354   :  { %354 = vsyncpa [#allocation5], 1 }

</bundles_post_ra>
